<compile_context>
chip_gen: v6e
topology: v6e:2x2x1
jax: 0.10.0
libtpu: 0.0.40
codegen_flags: <defaults>
</compile_context>

<pallas_src>
import functools

import jax
import jax.numpy as jnp
from jax import lax
from jax.experimental import pallas as pl
from jax.experimental.pallas import tpu as pltpu

LEAKY_SLOPE = 0.2
BN_EPS = 1e-10  # the module explicitly passes eps=1e-10 to SynchronizedBatchNorm2d


def _round_up(x, m):
    return ((x + m - 1) // m) * m


# ---------------- kernel 1: conv-as-GEMM + per-channel sum / sum-of-squares ----------
def _conv_stats_kernel(p_ref, w_ref, conv_ref, sum_ref, sq_ref, acc_ref):
    i = pl.program_id(1)          # M tile index
    k = pl.program_id(2)          # K reduction tile index

    @pl.when(k == 0)
    def _():
        acc_ref[...] = jnp.zeros_like(acc_ref)

    @pl.when((i == 0) & (k == 0))
    def _():
        # new Cout tile: reset the resident per-channel stat accumulators
        sum_ref[...] = jnp.zeros_like(sum_ref)
        sq_ref[...] = jnp.zeros_like(sq_ref)

    # bf16 x bf16 -> f32 accumulate on the MXU
    acc_ref[...] += jnp.dot(p_ref[...], w_ref[...],
                            preferred_element_type=jnp.float32)

    @pl.when(k == pl.num_programs(2) - 1)
    def _():
        a = acc_ref[...]
        conv_ref[...] = a
        # padded M rows are exactly zero (zero patches), so they add nothing here;
        # the wrapper divides by the true (unpadded) M.
        sum_ref[...] += jnp.sum(a, axis=0, keepdims=True)
        sq_ref[...] += jnp.sum(a * a, axis=0, keepdims=True)


# ---------------- kernel 2: class-conditional BN affine + LeakyReLU ------------------
def _bn_act_kernel(conv_ref, oh_ref, scale_ref, shift_ref, out_ref, *, ncp):
    oh = oh_ref[...]            # (TM, ncp) exact one-hot (all-zero for padded rows)
    scale = scale_ref[...]      # (ncp, TN)  per-class scale  = gamma * rsqrt(var+eps)
    shift = shift_ref[...]      # (ncp, TN)  per-class shift  = beta - scale * mean
    # exact f32 per-row selection; ncp is tiny (num_class padded to 8) so this is a
    # handful of VPU FMAs.  For very large num_class an MXU one-hot matmul is better.
    sc = oh[:, 0:1] * scale[0:1, :]
    sh = oh[:, 0:1] * shift[0:1, :]
    for c in range(1, ncp):
        sc = sc + oh[:, c:c + 1] * scale[c:c + 1, :]
        sh = sh + oh[:, c:c + 1] * shift[c:c + 1, :]
    yv = conv_ref[...] * sc + sh
    out_ref[...] = jnp.where(yv >= 0, yv, LEAKY_SLOPE * yv).astype(out_ref.dtype)


def unet_down(x, y, params, z=None, *, num_class=1, kernel=4, stride=2, padding=1):
    """Forward pass of UNetDown.  x: (N, Cin, H, W) NCHW f32, y: (N,) int labels."""
    w, gamma, beta = params["w"], params["gamma"], params["beta"]

    if z is not None:
        width = x.shape[2]
        zt = jnp.broadcast_to(z[:, :, None, None],
                              (z.shape[0], z.shape[1], width, x.shape[3]))
        x = jnp.concatenate([x, zt], axis=1)

    N, Cin, H, W = x.shape
    Cout = w.shape[0]
    Ho = (H + 2 * padding - kernel) // stride + 1
    Wo = (W + 2 * padding - kernel) // stride + 1
    M = N * Ho * Wo
    K = kernel * kernel * Cin

    # ---- im2col directly in bf16 (no f32 round trip of the expanded patch tensor) ----
    x_nhwc = jnp.transpose(x.astype(jnp.bfloat16), (0, 2, 3, 1))
    xp = jnp.pad(x_nhwc, ((0, 0), (padding, padding), (padding, padding), (0, 0)))
    cols = []
    for kh in range(kernel):
        for kw in range(kernel):
            cols.append(xp[:, kh:kh + stride * Ho:stride, kw:kw + stride * Wo:stride, :])
    patches = jnp.concatenate(cols, axis=-1).reshape(M, K)            # (M, K) bf16

    # PyTorch conv weight (Cout, Cin, KH, KW) -> (K, Cout), kh-major / kw / cin
    w_mat = jnp.transpose(w, (2, 3, 1, 0)).reshape(K, Cout).astype(jnp.bfloat16)

    # ---- tiling: lane-dense Cout (128), M tiles, K reduction tiles -------------------
    TN = 128
    TM = 256 if M >= 256 else _round_up(M, 8)
    TK = 256 if K >= 256 else _round_up(K, 128)
    Mp = _round_up(M, TM)
    Kp = _round_up(K, TK)
    Cp = _round_up(Cout, TN)
    n_m, n_co, n_k = Mp // TM, Cp // TN, Kp // TK

    patches = jnp.pad(patches, ((0, Mp - M), (0, Kp - K)))
    w_mat = jnp.pad(w_mat, ((0, Kp - K), (0, Cp - Cout)))

    vmem_limit = 32 * 1024 * 1024  # generous but safe on v5e/v6e/v7x

    cost1 = pl.CostEstimate(
        flops=2 * Mp * Kp * Cp,
        transcendentals=0,
        bytes_accessed=Mp * Kp * 2 + Kp * Cp * 2 + Mp * Cp * 4 + 2 * Cp * 4)

    conv, csum, csq = pl.pallas_call(
        _conv_stats_kernel,
        out_shape=(jax.ShapeDtypeStruct((Mp, Cp), jnp.float32),
                   jax.ShapeDtypeStruct((1, Cp), jnp.float32),
                   jax.ShapeDtypeStruct((1, Cp), jnp.float32)),
        grid=(n_co, n_m, n_k),
        in_specs=[
            pl.BlockSpec((TM, TK), lambda j, i, k: (i, k)),   # patches
            pl.BlockSpec((TK, TN), lambda j, i, k: (k, j)),   # weights
        ],
        out_specs=(
            pl.BlockSpec((TM, TN), lambda j, i, k: (i, j)),   # conv accumulator out
            pl.BlockSpec((1, TN), lambda j, i, k: (0, j)),    # per-channel sum (resident)
            pl.BlockSpec((1, TN), lambda j, i, k: (0, j)),    # per-channel sum of squares
        ),
        scratch_shapes=[pltpu.VMEM((TM, TN), jnp.float32)],
        compiler_params=pltpu.CompilerParams(
            dimension_semantics=("parallel", "arbitrary", "arbitrary"),
            vmem_limit_bytes=vmem_limit),
        cost_estimate=cost1,
    )(patches, w_mat)

    # ---- tiny per-channel / per-class math in JAX (no (M, Cout) broadcasts) ----------
    mean = csum[0] / float(M)                                   # true M: padded rows are 0
    var = jnp.maximum(csq[0] / float(M) - mean * mean, 0.0)
    inv = lax.rsqrt(var + BN_EPS)                               # (Cp,)

    if num_class <= 1:
        g_tab = jnp.reshape(gamma, (1, Cout)).astype(jnp.float32)
        b_tab = jnp.reshape(beta, (1, Cout)).astype(jnp.float32)
        cls = jnp.zeros((N,), jnp.int32)
        NC = 1
    else:
        g_tab = jnp.reshape(gamma, (num_class, Cout)).astype(jnp.float32)
        b_tab = jnp.reshape(beta, (num_class, Cout)).astype(jnp.float32)
        cls = y.astype(jnp.int32)
        NC = num_class
    NCp = _round_up(NC, 8)
    g_tab = jnp.pad(g_tab, ((0, NCp - NC), (0, Cp - Cout)))
    b_tab = jnp.pad(b_tab, ((0, NCp - NC), (0, Cp - Cout)))
    scale_tab = g_tab * inv[None, :]                            # (NCp, Cp)
    shift_tab = b_tab - scale_tab * mean[None, :]               # (NCp, Cp)

    # per-row one-hot class selector (Mp x NCp, tiny); padded rows select nothing
    cls_row = jnp.repeat(cls, Ho * Wo)                          # rows are n-major
    cls_row = jnp.pad(cls_row, (0, Mp - M), constant_values=-1)
    onehot = (cls_row[:, None] == jnp.arange(NCp, dtype=jnp.int32)[None, :]
              ).astype(jnp.float32)                             # (Mp, NCp)

    cost2 = pl.CostEstimate(
        flops=4 * Mp * NCp * Cp + 3 * Mp * Cp,
        transcendentals=0,
        bytes_accessed=2 * Mp * Cp * 4 + Mp * NCp * 4 + 2 * NCp * Cp * 4)

    out_p = pl.pallas_call(
        functools.partial(_bn_act_kernel, ncp=NCp),
        out_shape=jax.ShapeDtypeStruct((Mp, Cp), jnp.float32),
        grid=(n_m, n_co),
        in_specs=[
            pl.BlockSpec((TM, TN), lambda i, j: (i, j)),        # conv
            pl.BlockSpec((TM, NCp), lambda i, j: (i, 0)),       # one-hot rows
            pl.BlockSpec((NCp, TN), lambda i, j: (0, j)),       # scale table
            pl.BlockSpec((NCp, TN), lambda i, j: (0, j)),       # shift table
        ],
        out_specs=pl.BlockSpec((TM, TN), lambda i, j: (i, j)),
        compiler_params=pltpu.CompilerParams(
            dimension_semantics=("parallel", "parallel"),
            vmem_limit_bytes=vmem_limit),
        cost_estimate=cost2,
    )(conv, onehot, scale_tab, shift_tab)

    out = out_p[:M, :Cout].reshape(N, Ho, Wo, Cout)
    return jnp.transpose(out, (0, 3, 1, 2))                     # back to NCHW


def _reference(x, y, params, *, num_class):
    """Pure-JAX reference.  Conv operands are quantized to bf16 (same as the kernel's
    MXU-native bf16 inputs) so the comparison isolates kernel correctness."""
    w, gamma, beta = params["w"], params["gamma"], params["beta"]
    xq = x.astype(jnp.bfloat16).astype(jnp.float32)
    wq = w.astype(jnp.bfloat16).astype(jnp.float32)
    out = lax.conv_general_dilated(
        xq, wq, window_strides=(2, 2), padding=((1, 1), (1, 1)),
        dimension_numbers=("NCHW", "OIHW", "NCHW"),
        precision=lax.Precision.HIGHEST)
    mean = jnp.mean(out, axis=(0, 2, 3), keepdims=True)
    var = jnp.mean((out - mean) ** 2, axis=(0, 2, 3), keepdims=True)
    xhat = (out - mean) * lax.rsqrt(var + BN_EPS)
    if num_class <= 1:
        g = gamma.reshape(1, -1, 1, 1)
        b = beta.reshape(1, -1, 1, 1)
    else:
        g = gamma[y][:, :, None, None]
        b = beta[y][:, :, None, None]
    o = g * xhat + b
    return jnp.where(o >= 0, o, LEAKY_SLOPE * o)


if __name__ == "__main__":
    key = jax.random.PRNGKey(0)
    k1, k2, k3, k4, k5 = jax.random.split(key, 5)

    N, Cin, H, W = 2, 4, 16, 16
    Cout, num_class = 8, 3

    x = jax.random.normal(k1, (N, Cin, H, W), jnp.float32)
    y = jax.random.randint(k2, (N,), 0, num_class)
    # synthetic parameters (nn.Conv2d(in,out,4,2,1,bias=False) + class-conditional BN affine)
    w = 0.1 * jax.random.normal(k3, (Cout, Cin, 4, 4), jnp.float32)
    gamma = 1.0 + 0.1 * jax.random.normal(k4, (num_class, Cout), jnp.float32)
    beta = 0.1 * jax.random.normal(k5, (num_class, Cout), jnp.float32)
    params = {"w": w, "gamma": gamma, "beta": beta}

    out = unet_down(x, y, params, num_class=num_class)
    out = jax.block_until_ready(out)

    ref = _reference(x, y, params, num_class=num_class)
    assert out.shape == (N, Cout, H // 2, W // 2), out.shape
    err = float(jnp.max(jnp.abs(out - ref)))
    assert jnp.allclose(out, ref, atol=2e-3, rtol=2e-3), err

    print("KERNEL_OK")
</pallas_src>

<mosaic_0001>
module attributes {stable_mosaic.version = 11 : i64} {
  func.func @_conv_stats_kernel(%arg0: i32, %arg1: i32, %arg2: i32, %arg3: memref<128x128xbf16, #tpu.memory_space<vmem>>, %arg4: memref<128x128xbf16, #tpu.memory_space<vmem>>, %arg5: memref<128x128xf32, #tpu.memory_space<vmem>>, %arg6: memref<1x128xf32, #tpu.memory_space<vmem>>, %arg7: memref<1x128xf32, #tpu.memory_space<vmem>>, %arg8: memref<128x128xf32, #tpu.memory_space<vmem>>) attributes {dimension_semantics = [#tpu.dimension_semantics<parallel>, #tpu.dimension_semantics<arbitrary>, #tpu.dimension_semantics<arbitrary>], iteration_bounds = array<i64: 1, 1, 1>, scalar_prefetch = 0 : i64, scratch_operands = 1 : i64, tpu.core_type = #tpu.core_type<tc>, window_params = [{transform_indices = @transform_0, window_bounds = array<i64: 128, 128>}, {transform_indices = @transform_1, window_bounds = array<i64: 128, 128>}, {transform_indices = @transform_2, window_bounds = array<i64: 128, 128>}, {transform_indices = @transform_3, window_bounds = array<i64: 1, 128>}, {transform_indices = @transform_4, window_bounds = array<i64: 1, 128>}]} {
    %c0_i32 = arith.constant 0 : i32
    %0 = arith.cmpi eq, %arg2, %c0_i32 : i32
    %1 = arith.extui %0 : i1 to i32
    %c0_i32_0 = arith.constant 0 : i32
    %2 = arith.cmpi ne, %1, %c0_i32_0 : i32
    scf.if %2 {
      %cst_13 = arith.constant 0.000000e+00 : f32
      %17 = vector.broadcast %cst_13 : f32 to vector<128x128xf32>
      %c0_14 = arith.constant 0 : index
      %c0_15 = arith.constant 0 : index
      %18 = vector.load %arg8[%c0_14, %c0_15] : memref<128x128xf32, #tpu.memory_space<vmem>>, vector<128x128xf32>
      tpu.vector_store %arg8[%c0_14, %c0_15], %17 {strides = array<i32>} : memref<128x128xf32, #tpu.memory_space<vmem>>, vector<128x128xf32>,
    } else {
    }
    %c0_i32_1 = arith.constant 0 : i32
    %3 = arith.cmpi eq, %arg1, %c0_i32_1 : i32
    %c0_i32_2 = arith.constant 0 : i32
    %4 = arith.cmpi eq, %arg2, %c0_i32_2 : i32
    %5 = arith.andi %3, %4 : i1
    %6 = arith.extui %5 : i1 to i32
    %c0_i32_3 = arith.constant 0 : i32
    %7 = arith.cmpi ne, %6, %c0_i32_3 : i32
    scf.if %7 {
      %cst_13 = arith.constant 0.000000e+00 : f32
      %17 = vector.broadcast %cst_13 : f32 to vector<1x128xf32>
      %c0_14 = arith.constant 0 : index
      %c0_15 = arith.constant 0 : index
      %18 = vector.load %arg6[%c0_14, %c0_15] : memref<1x128xf32, #tpu.memory_space<vmem>>, vector<1x128xf32>
      tpu.vector_store %arg6[%c0_14, %c0_15], %17 {strides = array<i32>} : memref<1x128xf32, #tpu.memory_space<vmem>>, vector<1x128xf32>,
      %cst_16 = arith.constant 0.000000e+00 : f32
      %19 = vector.broadcast %cst_16 : f32 to vector<1x128xf32>
      %c0_17 = arith.constant 0 : index
      %c0_18 = arith.constant 0 : index
      %20 = vector.load %arg7[%c0_17, %c0_18] : memref<1x128xf32, #tpu.memory_space<vmem>>, vector<1x128xf32>
      tpu.vector_store %arg7[%c0_17, %c0_18], %19 {strides = array<i32>} : memref<1x128xf32, #tpu.memory_space<vmem>>, vector<1x128xf32>,
    } else {
    }
    %c0 = arith.constant 0 : index
    %c0_4 = arith.constant 0 : index
    %8 = vector.load %arg8[%c0, %c0_4] : memref<128x128xf32, #tpu.memory_space<vmem>>, vector<128x128xf32>
    %c0_5 = arith.constant 0 : index
    %c0_6 = arith.constant 0 : index
    %9 = vector.load %arg3[%c0_5, %c0_6] : memref<128x128xbf16, #tpu.memory_space<vmem>>, vector<128x128xbf16>
    %c0_7 = arith.constant 0 : index
    %c0_8 = arith.constant 0 : index
    %10 = vector.load %arg4[%c0_7, %c0_8] : memref<128x128xbf16, #tpu.memory_space<vmem>>, vector<128x128xbf16>
    %cst = arith.constant dense<0.000000e+00> : vector<128x128xf32>
    %11 = tpu.matmul %9, %10, %cst {dimension_numbers = #tpu.dot_dimension_numbers<[1], [0], [0], [1], [0, 0, 1, 1], [], []>} : vector<128x128xbf16>, vector<128x128xbf16>, vector<128x128xf32> -> vector<128x128xf32>
    %12 = arith.addf %8, %11 : vector<128x128xf32>
    %c0_9 = arith.constant 0 : index
    %c0_10 = arith.constant 0 : index
    %13 = vector.load %arg8[%c0_9, %c0_10] : memref<128x128xf32, #tpu.memory_space<vmem>>, vector<128x128xf32>
    tpu.vector_store %arg8[%c0_9, %c0_10], %12 {strides = array<i32>} : memref<128x128xf32, #tpu.memory_space<vmem>>, vector<128x128xf32>,
    %c0_i32_11 = arith.constant 0 : i32
    %14 = arith.cmpi eq, %arg2, %c0_i32_11 : i32
    %15 = arith.extui %14 : i1 to i32
    %c0_i32_12 = arith.constant 0 : i32
    %16 = arith.cmpi ne, %15, %c0_i32_12 : i32
    scf.if %16 {
      %c0_13 = arith.constant 0 : index
      %c0_14 = arith.constant 0 : index
      %17 = vector.load %arg8[%c0_13, %c0_14] : memref<128x128xf32, #tpu.memory_space<vmem>>, vector<128x128xf32>
      %c0_15 = arith.constant 0 : index
      %c0_16 = arith.constant 0 : index
      %18 = vector.load %arg5[%c0_15, %c0_16] : memref<128x128xf32, #tpu.memory_space<vmem>>, vector<128x128xf32>
      tpu.vector_store %arg5[%c0_15, %c0_16], %17 {strides = array<i32>} : memref<128x128xf32, #tpu.memory_space<vmem>>, vector<128x128xf32>,
      %c0_17 = arith.constant 0 : index
      %c0_18 = arith.constant 0 : index
      %19 = vector.load %arg6[%c0_17, %c0_18] : memref<1x128xf32, #tpu.memory_space<vmem>>, vector<1x128xf32>
      %cst_19 = arith.constant dense<0.000000e+00> : vector<128xf32>
      %20 = vector.multi_reduction <add>, %17, %cst_19 [0] : vector<128x128xf32> to vector<128xf32>
      %21 = vector.shape_cast %20 : vector<128xf32> to vector<1x128xf32>
      %22 = arith.addf %19, %21 : vector<1x128xf32>
      %c0_20 = arith.constant 0 : index
      %c0_21 = arith.constant 0 : index
      %23 = vector.load %arg6[%c0_20, %c0_21] : memref<1x128xf32, #tpu.memory_space<vmem>>, vector<1x128xf32>
      tpu.vector_store %arg6[%c0_20, %c0_21], %22 {strides = array<i32>} : memref<1x128xf32, #tpu.memory_space<vmem>>, vector<1x128xf32>,
      %c0_22 = arith.constant 0 : index
      %c0_23 = arith.constant 0 : index
      %24 = vector.load %arg7[%c0_22, %c0_23] : memref<1x128xf32, #tpu.memory_space<vmem>>, vector<1x128xf32>
      %25 = arith.mulf %17, %17 : vector<128x128xf32>
      %cst_24 = arith.constant dense<0.000000e+00> : vector<128xf32>
      %26 = vector.multi_reduction <add>, %25, %cst_24 [0] : vector<128x128xf32> to vector<128xf32>
      %27 = vector.shape_cast %26 : vector<128xf32> to vector<1x128xf32>
      %28 = arith.addf %24, %27 : vector<1x128xf32>
      %c0_25 = arith.constant 0 : index
      %c0_26 = arith.constant 0 : index
      %29 = vector.load %arg7[%c0_25, %c0_26] : memref<1x128xf32, #tpu.memory_space<vmem>>, vector<1x128xf32>
      tpu.vector_store %arg7[%c0_25, %c0_26], %28 {strides = array<i32>} : memref<1x128xf32, #tpu.memory_space<vmem>>, vector<1x128xf32>,
    } else {
    }
    return
  }
  func.func @transform_0(%arg0: i32, %arg1: i32, %arg2: i32) -> (i32, i32) {
    %c0_i32 = arith.constant 0 : i32
    return %arg1, %arg2 : i32, i32
  }
  func.func @transform_1(%arg0: i32, %arg1: i32, %arg2: i32) -> (i32, i32) {
    %c0_i32 = arith.constant 0 : i32
    return %arg2, %arg0 : i32, i32
  }
  func.func @transform_2(%arg0: i32, %arg1: i32, %arg2: i32) -> (i32, i32) {
    %c0_i32 = arith.constant 0 : i32
    return %arg1, %arg0 : i32, i32
  }
  func.func @transform_3(%arg0: i32, %arg1: i32, %arg2: i32) -> (i32, i32) {
    %c0_i32 = arith.constant 0 : i32
    %c0_i32_0 = arith.constant 0 : i32
    return %c0_i32, %arg0 : i32, i32
  }
  func.func @transform_4(%arg0: i32, %arg1: i32, %arg2: i32) -> (i32, i32) {
    %c0_i32 = arith.constant 0 : i32
    %c0_i32_0 = arith.constant 0 : i32
    return %c0_i32, %arg0 : i32, i32
  }
}

</mosaic_0001>

<bundles_post_ra>
// kernel: tpu_custom_call.1
= control target key start
LH: loop header
LB: loop body
LE: loop exit
PB: predicated region body
PF: predicated region fallthrough
CT: control target
= control target key end

     0   :  { %10 = vsyncpa [#allocation4], 0  ;;  %s777_s0 = inlined_call_operand.hbm [shape: bf16[128,128], index: 0, kind: input, shape index: {}]   ;;  %s778_s1 = inlined_call_operand.hbm [shape: bf16[128,128], index: 1, kind: input, shape index: {}]   ;;  %s779_s2 = inlined_call_operand.hbm [shape: f32[128,128], index: 2, kind: output, shape index: {0}]   ;;  %s780_s3 = inlined_call_operand.hbm [shape: f32[1,128], index: 3, kind: output, shape index: {1}]   ;;  %s781_s4 = inlined_call_operand.hbm [shape: f32[1,128], index: 4, kind: output, shape index: {2}]  }
   0x1   :  { %11 = vsyncpa [#allocation7], 0 }
   0x2   :  { %12 = vsyncpa [#allocation5], 0 }
   0x3   :  { %13 = vsyncpa [#allocation10], 0  ;;  %s703_s15 = smov [#allocation3]  }
   0x4   :  { %s19_s16 = sshll.u32 %s703_s15, 4  ;;  %s20_s16 = int_to_ptr.vmem [resolvable:$true] %s19_s16 }
   0x5   :  { %s603_s17 = scalar_lea.vmem %s20_s16, 1024  ;;  %p608_p1 = scmp.lt.s32.totalorder %s20_s16, %s20_s16 }
   0x6   :  { %p604_p0 = scmp.ne.s32.totalorder %s20_s16, %s603_s17  ;;  %p609_p2 = scmp.lt.s32.totalorder %s603_s17, %s603_s17 }
   0x8   :  { %p610_p3 = por %p609_p2, %p608_p1 }
   0xa   :  { %p611_p4 = pnand %p610_p3, %p604_p0 }
   0xc   :  { %614 = shalt.err (!%p611_p4)
}
   0xd   :  { %s704_s18 = smov 64   ;;  %s705_s19 = smov 4  }
   0xe   :  { %25 = dma.hbm_to_vmem [thread:$0]  %s777_s0, 1024, %s20_s16, [#allocation4], %s704_s18, %s704_s18, %s705_s19  }
   0xf   :  { %s706_s22 = smov [#allocation6]  }
  0x10   :  { %s31_s23 = sshll.u32 %s706_s22, 4  ;;  %s32_s23 = int_to_ptr.vmem [resolvable:$true] %s31_s23 }
  0x11   :  { %s623_s24 = scalar_lea.vmem %s32_s23, 1024  ;;  %p628_p6 = scmp.lt.s32.totalorder %s32_s23, %s32_s23 }
  0x12   :  { %p624_p5 = scmp.ne.s32.totalorder %s32_s23, %s623_s24  ;;  %p629_p7 = scmp.lt.s32.totalorder %s623_s24, %s623_s24 }
  0x14   :  { %p630_p8 = por %p629_p7, %p628_p6 }
  0x16   :  { %p631_p9 = pnand %p630_p8, %p624_p5 }
  0x18   :  { %634 = shalt.err (!%p631_p9)
}
  0x19   :  { %37 = dma.hbm_to_vmem [thread:$0]  %s778_s1, 1024, %s32_s23, [#allocation7], %s704_s18, %s704_s18, %s705_s19  }
  0x1a   :  { %695 = dma.done.wait [#allocation4], 1024  }
  0x1b   :  { %696 = vsyncadd [#allocation4], 4294966272 }
  0x1c   :  { %697 = dma.done.wait [#allocation7], 1024  }
  0x1d   :  { %698 = vsyncadd [#allocation7], 4294966272  ;;  %v579_v0 = vld [vmem:[#allocation6 + $0x38] sm:$0xff]   ;;  %v580_v1 = vld [vmem:[#allocation6 + $0x30] sm:$0xff]   ;;  %v707_v16 = vmov 0.0   ;;  %s708_s0 = smov [#allocation8]  }
  0x1e   :  { %521 = vmatprep.subr.bf16.mxu0 %v579_v0  ;;  %553 = vmatprep.subr.bf16.mxu1 %v579_v0  ;;  %v581_v2 = vld [vmem:[#allocation6 + $0x28] sm:$0xff]   ;;  %v582_v3 = vld [vmem:[#allocation6 + $0x20] sm:$0xff]   ;;  %v583_v5 = vld [vmem:[#allocation6 + $0x18] sm:$0xff]   ;;  %70 = vst [vmem:[#allocation9] sm:$0x1] %v707_v16  ;;  %s449_s1 = sshll.u32 %s708_s0, 4  ;;  %s450_s1 = int_to_ptr.vmem [resolvable:$true] %s449_s1 }
  0x1f   :  { %522 = vmatpush3.bf16.msra.mxu0 %v579_v0  ;;  %561 = vmatpush3.bf16.msra.mxu1 %v579_v0  ;;  %v587_v4 = vld [vmem:[#allocation3] sm:$0xff]   ;;  %v584_v7 = vld [vmem:[#allocation6 + $0x10] sm:$0xff]   ;;  %v585_v8 = vld [vmem:[#allocation6 + $0x8] sm:$0xff]   ;;  %71 = vst [vmem:[#allocation11] sm:$0x1] %v707_v16  ;;  %s635_s27 = scalar_lea.vmem %s450_s1, 2048  ;;  %p640_p11 = scmp.lt.s32.totalorder %s450_s1, %s450_s1 }
  0x20   :  { %523 = vmatprep.subr.bf16.mxu0 %v580_v1  ;;  %554 = vmatprep.subr.bf16.mxu1 %v580_v1  ;;  %v591_v6 = vld [vmem:[#allocation3 + $0x20] sm:$0xff]   ;;  %v588_v10 = vld [vmem:[#allocation3 + $0x8] sm:$0xff]   ;;  %v589_v12 = vld [vmem:[#allocation3 + $0x10] sm:$0xff]   ;;  %p636_p10 = scmp.ne.s32.totalorder %s450_s1, %s635_s27  ;;  %p641_p12 = scmp.lt.s32.totalorder %s635_s27, %s635_s27 }
  0x21   :  { %537 = vmatprep.mubr.bf16.mxu0 %v587_v4  ;;  %545 = vmatprep.mubr.bf16.mxu1 %v591_v6  ;;  %v586_v9 = vld [vmem:[#allocation6] sm:$0xff]   ;;  %v592_v11 = vld [vmem:[#allocation3 + $0x28] sm:$0xff]   ;;  %v593_v13 = vld [vmem:[#allocation3 + $0x30] sm:$0xff]  }
  0x22   :  { %v590_v14 = vld [vmem:[#allocation3 + $0x18] sm:$0xff]   ;;  %p642_p13 = por %p641_p12, %p640_p11 }
  0x23   :  { %524 = vmatpush3.bf16.msra.mxu0 %v580_v1  ;;  %562 = vmatpush3.bf16.msra.mxu1 %v580_v1  ;;  %v594_v15 = vld [vmem:[#allocation3 + $0x38] sm:$0xff]  }
  0x24   :  { %525 = vmatprep.subr.bf16.mxu0 %v581_v2  ;;  %555 = vmatprep.subr.bf16.mxu1 %v581_v2  ;;  %p643_p0 = pnand %p642_p13, %p636_p10 }
  0x27   :  { %526 = vmatpush3.bf16.msra.mxu0 %v581_v2  ;;  %563 = vmatpush3.bf16.msra.mxu1 %v581_v2 }
  0x28   :  { %527 = vmatprep.subr.bf16.mxu0 %v582_v3  ;;  %556 = vmatprep.subr.bf16.mxu1 %v582_v3 }
  0x2b   :  { %528 = vmatpush3.bf16.msra.mxu0 %v582_v3  ;;  %564 = vmatpush3.bf16.msra.mxu1 %v582_v3 }
  0x2c   :  { %529 = vmatprep.subr.bf16.mxu0 %v583_v5  ;;  %557 = vmatprep.subr.bf16.mxu1 %v583_v5 }
  0x2f   :  { %530 = vmatpush3.bf16.msra.mxu0 %v583_v5  ;;  %565 = vmatpush3.bf16.msra.mxu1 %v583_v5 }
  0x30   :  { %531 = vmatprep.subr.bf16.mxu0 %v584_v7  ;;  %558 = vmatprep.subr.bf16.mxu1 %v584_v7 }
  0x33   :  { %532 = vmatpush3.bf16.msra.mxu0 %v584_v7  ;;  %566 = vmatpush3.bf16.msra.mxu1 %v584_v7 }
  0x34   :  { %533 = vmatprep.subr.bf16.mxu0 %v585_v8  ;;  %559 = vmatprep.subr.bf16.mxu1 %v585_v8 }
  0x37   :  { %534 = vmatpush3.bf16.msra.mxu0 %v585_v8  ;;  %567 = vmatpush3.bf16.msra.mxu1 %v585_v8 }
  0x38   :  { %535 = vmatprep.subr.bf16.mxu0 %v586_v9  ;;  %560 = vmatprep.subr.bf16.mxu1 %v586_v9 }
  0x3b   :  { %536 = vmatpush3.bf16.msra.mxu0 %v586_v9  ;;  %568 = vmatpush3.bf16.msra.mxu1 %v586_v9 }
  0x3e   :  { %538 = vmatmul.mubr.bf16.vlgmr.msra.gmra.mxu0 %v588_v10  ;;  %546 = vmatmul.mubr.bf16.vlgmr.msra.gmra.mxu1 %v592_v11 }
  0x3f   :  { %541 = vmatprep.mubr.bf16.mxu0 %v589_v12  ;;  %549 = vmatprep.mubr.bf16.mxu1 %v593_v13 }
  0x46   :  { %542 = vmatmul.mubr.bf16.gmra.mxu0 %v590_v14  ;;  %550 = vmatmul.mubr.bf16.gmra.mxu1 %v594_v15 }
  0xfe   :  { %v539_v17 = vpop.f32.mrf.mxu0  ;;  %v744_v18 = vpop.f32.mrf.mxu1 }
  0xff   :  { %366 = vst [vmem:[#allocation8 + $0x10] sm:$0xff] %v539_v17  ;;  %374 = vst [vmem:[#allocation8 + $0x50] sm:$0xff] %v744_v18  ;;  %v407_v30 = vmul.f32 %v539_v17, %v539_v17 }
 0x100   :  { %v250_v19 = vpop.f32.mrf.mxu0  ;;  %v747_v20 = vpop.f32.mrf.mxu1 }
 0x101   :  { %364 = vst [vmem:[#allocation8] sm:$0xff] %v250_v19  ;;  %372 = vst [vmem:[#allocation8 + $0x40] sm:$0xff] %v747_v20  ;;  %v405_v25 = vmul.f32 %v250_v19, %v250_v19 }
 0x102   :  { %v540_v21 = vpop.f32.mrf.mxu0  ;;  %v750_v22 = vpop.f32.mrf.mxu1 }
 0x103   :  { %367 = vst [vmem:[#allocation8 + $0x18] sm:$0xff] %v540_v21  ;;  %375 = vst [vmem:[#allocation8 + $0x58] sm:$0xff] %v750_v22  ;;  %v408_v35 = vmul.f32 %v540_v21, %v540_v21 }
 0x104   :  { %v253_v23 = vpop.f32.mrf.mxu0  ;;  %v285_v24 = vpop.f32.mrf.mxu1 }
 0x105   :  { %365 = vst [vmem:[#allocation8 + $0x8] sm:$0xff] %v253_v23  ;;  %v381_v26 = vadd.f32 %v253_v23, %v250_v19  ;;  %v406_v27 = vmul.f32 %v253_v23, %v253_v23  ;;  %373 = vst [vmem:[#allocation8 + $0x48] sm:$0xff] %v285_v24 }
 0x106   :  { %v543_v28 = vpop.f32.mrf.mxu0  ;;  %v753_v29 = vpop.f32.mrf.mxu1 }
 0x107   :  { %v382_v31 = vadd.f32 %v539_v17, %v381_v26  ;;  %v421_v32 = vadd.f32 %v406_v27, %v405_v25  ;;  %370 = vst [vmem:[#allocation8 + $0x30] sm:$0xff] %v543_v28  ;;  %378 = vst [vmem:[#allocation8 + $0x70] sm:$0xff] %v753_v29 }
 0x108   :  { %v266_v33 = vpop.f32.mrf.mxu0  ;;  %v298_v34 = vpop.f32.mrf.mxu1 }
 0x109   :  { %v422_v36 = vadd.f32 %v421_v32, %v407_v30  ;;  %368 = vst [vmem:[#allocation8 + $0x20] sm:$0xff] %v266_v33  ;;  %v383_v37 = vadd.f32 %v540_v21, %v382_v31  ;;  %376 = vst [vmem:[#allocation8 + $0x60] sm:$0xff] %v298_v34  ;;  %v409_v41 = vmul.f32 %v266_v33, %v266_v33 }
 0x10a   :  { %v544_v38 = vpop.f32.mrf.mxu0  ;;  %v552_v39 = vpop.f32.mrf.mxu1 }
 0x10b   :  { %v384_v40 = vadd.f32 %v383_v37, %v266_v33  ;;  %v423_v42 = vadd.f32 %v422_v36, %v408_v35  ;;  %371 = vst [vmem:[#allocation8 + $0x38] sm:$0xff] %v544_v38  ;;  %379 = vst [vmem:[#allocation8 + $0x78] sm:$0xff] %v552_v39 }
 0x10c   :  { %v269_v43 = vpop.f32.mrf.mxu0  ;;  %v301_v44 = vpop.f32.mrf.mxu1 }
 0x10d   :  { %v424_v45 = vadd.f32 %v423_v42, %v409_v41  ;;  %369 = vst [vmem:[#allocation8 + $0x28] sm:$0xff] %v269_v43  ;;  %v385_v46 = vadd.f32 %v384_v40, %v269_v43  ;;  %v410_v47 = vmul.f32 %v269_v43, %v269_v43  ;;  %377 = vst [vmem:[#allocation8 + $0x68] sm:$0xff] %v301_v44 }
 0x10e   :  { %646 = shalt.err (!%p643_p0)
}
 0x10f   :  { %s709_s28 = smov 128   ;;  %s710_s29 = smov 8   ;;  %v411_v48 = vmul.f32 %v543_v28, %v543_v28  ;;  %v386_v49 = vadd.f32 %v543_v28, %v385_v46  ;;  %v425_v50 = vadd.f32 %v424_v45, %v410_v47  ;;  %v412_v51 = vmul.f32 %v544_v38, %v544_v38  ;;  %v404_v27 = vld [vmem:[#allocation11] sm:$0x1] }
 0x110   :  { %455 = dma.vmem_to_hbm [thread:$0]  %s450_s1, 2048, %s779_s2, [#allocation5], %s709_s28, %s709_s28, %s710_s29   ;;  %v413_v54 = vmul.f32 %v747_v20, %v747_v20  ;;  %v414_v58 = vmul.f32 %v285_v24, %v285_v24  ;;  %v415_v60 = vmul.f32 %v744_v18, %v744_v18  ;;  %v416_v63 = vmul.f32 %v750_v22, %v750_v22 }
 0x111   :  { %v387_v52 = vadd.f32 %v544_v38, %v386_v49  ;;  %v426_v53 = vadd.f32 %v425_v50, %v411_v48  ;;  %v417_v3 = vmul.f32 %v298_v34, %v298_v34  ;;  %v418_v7 = vmul.f32 %v301_v44, %v301_v44  ;;  %s711_s2 = smov [#allocation9]   ;;  %s712_s7 = smov [#allocation11]  }
 0x112   :  { %v419_v8 = vmul.f32 %v753_v29, %v753_v29  ;;  %v420_v11 = vmul.f32 %v552_v39, %v552_v39  ;;  %s462_s6 = sshll.u32 %s711_s2, 4  ;;  %s472_s8 = sshll.u32 %s712_s7, 4  ;;  %s463_s6 = int_to_ptr.vmem [resolvable:$true] %s462_s6  ;;  %s473_s8 = int_to_ptr.vmem [resolvable:$true] %s472_s8 }
 0x113   :  { %v427_v55 = vadd.f32 %v426_v53, %v412_v51  ;;  %v388_v56 = vadd.f32 %v387_v52, %v747_v20  ;;  %s655_s9 = scalar_lea.vmem %s463_s6, 16  ;;  %s659_s10 = scalar_lea.vmem %s463_s6, 32 }
 0x114   :  { %p656_p1 = scmp.ne.s32.totalorder %s463_s6, %s655_s9  ;;  %p660_p2 = scmp.lt.s32.totalorder %s463_s6, %s463_s6 }
 0x115   :  { %v389_v57 = vadd.f32 %v388_v56, %v285_v24  ;;  %v428_v59 = vadd.f32 %v427_v55, %v413_v54  ;;  %v380_v24 = vld [vmem:[#allocation9] sm:$0x1]  ;;  %p661_p3 = scmp.lt.s32.totalorder %s659_s10, %s655_s9 }
 0x117   :  { %v390_v61 = vadd.f32 %v744_v18, %v389_v57  ;;  %v429_v62 = vadd.f32 %v428_v59, %v414_v58  ;;  %p662_p4 = por %p661_p3, %p660_p2 }
 0x119   :  { %v430_v0 = vadd.f32 %v429_v62, %v415_v60  ;;  %v391_v1 = vadd.f32 %v750_v22, %v390_v61  ;;  %p663_p5 = pnand %p662_p4, %p656_p1 }
 0x11b   :  { %v392_v2 = vadd.f32 %v391_v1, %v298_v34  ;;  %v431_v4 = vadd.f32 %v430_v0, %v416_v63 }
 0x11d   :  { %v432_v5 = vadd.f32 %v431_v4, %v417_v3  ;;  %v393_v6 = vadd.f32 %v392_v2, %v301_v44 }
 0x11f   :  { %v394_v9 = vadd.f32 %v753_v29, %v393_v6  ;;  %v433_v10 = vadd.f32 %v432_v5, %v418_v7 }
 0x121   :  { %v395_v12 = vadd.f32 %v552_v39, %v394_v9  ;;  %v434_v13 = vadd.f32 %v433_v10, %v419_v8 }
 0x123   :  { %v396_v14 = vrot.slane %v395_v12, 4  ;;  %v435_v15 = vadd.f32 %v434_v13, %v420_v11 }
 0x125   :  { %v397_v16 = vadd.f32 %v396_v14, %v395_v12  ;;  %v436_v17 = vrot.slane %v435_v15, 4 }
 0x127   :  { %v398_v18 = vrot.slane %v397_v16, 2  ;;  %v437_v19 = vadd.f32 %v436_v17, %v435_v15 }
 0x129   :  { %v399_v20 = vadd.f32 %v398_v18, %v397_v16  ;;  %v438_v21 = vrot.slane %v437_v19, 2 }
 0x12b   :  { %v439_v22 = vadd.f32 %v438_v21, %v437_v19  ;;  %v400_v23 = vrot.slane %v399_v20, 1 }
 0x12d   :  { %v401_v25 = vadd.f32 %v400_v23, %v399_v20  ;;  %v440_v26 = vrot.slane %v439_v22, 1 }
 0x12f   :  { %v402_v28 = vadd.f32 %v401_v25, %v380_v24  ;;  %v441_v29 = vadd.f32 %v440_v26, %v439_v22 }
 0x131   :  { %403 = vst [vmem:[#allocation9] sm:$0x1] %v402_v28  ;;  %v442_v30 = vadd.f32 %v441_v29, %v404_v27 }
 0x132   :  { %666 = shalt.err (!%p663_p5)
}
 0x133   :  { %465 = dma.vmem_to_hbm [thread:$0]  %s463_s6, 16, %s780_s3, [#allocation10]   ;;  %443 = vst [vmem:[#allocation11] sm:$0x1] %v442_v30 }
 0x134   :  { %s675_s13 = scalar_lea.vmem %s473_s8, 16  ;;  %s679_s14 = scalar_lea.vmem %s473_s8, 32 }
 0x135   :  { %p676_p6 = scmp.ne.s32.totalorder %s473_s8, %s675_s13  ;;  %p680_p7 = scmp.lt.s32.totalorder %s473_s8, %s473_s8 }
 0x136   :  { %p681_p8 = scmp.lt.s32.totalorder %s679_s14, %s675_s13 }
 0x138   :  { %p682_p9 = por %p681_p8, %p680_p7 }
 0x13a   :  { %p683_p10 = pnand %p682_p9, %p676_p6 }
 0x13c   :  { %686 = shalt.err (!%p683_p10)
}
 0x13d   :  { %475 = dma.vmem_to_hbm [thread:$0]  %s473_s8, 16, %s781_s4, [#allocation10]  }
 0x13e   :  { %699 = dma.done.wait [#allocation5], 2048  }
 0x13f   :  { %700 = vsyncadd [#allocation5], 4294965248 }
 0x140   :  { %701 = dma.done.wait [#allocation10], 32  }
 0x141   :  { %702 = vsyncadd [#allocation10], 4294967264 }
 0x142   :  { %485 = vsyncpa [#allocation4], 1 }
 0x143   :  { %486 = vsyncpa [#allocation7], 1 }
 0x144   :  { %487 = vsyncpa [#allocation5], 1 }
 0x145   :  { %488 = vsyncpa [#allocation10], 1 }

</bundles_post_ra>
